<compile_context>
chip_gen: v7x
topology: tpu7x:2x2x1
jax: 0.10.0
libtpu: 0.0.40
codegen_flags: <defaults>
</compile_context>

<pallas_src>
import functools

import jax
import jax.numpy as jnp
from jax import lax
from jax.experimental import pallas as pl
from jax.experimental.pallas import tpu as pltpu


def _round_up(x, m):
    return (x + m - 1) // m * m


def _vmem_capacity_bytes():
    """Physical per-core VMEM; conservative fallback when not queryable."""
    try:
        cap = int(pltpu.get_tpu_info().vmem_capacity_bytes)
        if cap > 0:
            return cap
    except Exception:  # not on a TPU / interpret mode / older API
        pass
    return 64 * 2**20  # v7x-sized fallback: safe on every generation


# --------------------------------------------------------------------------- #
# Kernels
# --------------------------------------------------------------------------- #
def _attention_from_energy(energy, out_dtype):
    """softmax(rowmax(E) - E) == exp(rowmin(E) - E) / sum: one row reduction."""
    p = jnp.exp(jnp.min(energy, axis=-1, keepdims=True) - energy)
    denom = jnp.sum(p, axis=-1, keepdims=True)
    # Exact reciprocal: executes once per batch over only C values, so it is
    # free and removes the dominant numerical error of the approx EUP path.
    return (p * pl.reciprocal(denom, approx=False)).astype(out_dtype)


def _cam_slab_kernel(gamma_ref, x_ref, o_ref, *, precision):
    """Single-pass path: whole (C, N) slab resident in VMEM; grid = (B,)."""
    x = x_ref[0]  # (C, N), native dtype -> native MXU rate for bf16
    energy = lax.dot_general(                      # E = X @ X^T, f32 accumulate
        x, x, dimension_numbers=(((1,), (1,)), ((), ())),
        preferred_element_type=jnp.float32, precision=precision)
    attn = _attention_from_energy(energy, x.dtype)          # (C, C)
    out = jnp.dot(attn, x, preferred_element_type=jnp.float32,
                  precision=precision)                      # (C, N) f32
    o_ref[0] = (gamma_ref[0] * out + x.astype(jnp.float32)).astype(o_ref.dtype)


def _cam_tiled_kernel(gamma_ref, x_ref, o_ref, acc_ref, attn_ref, *, precision):
    """Two-phase path: grid = (B, 2, nt); x streamed twice from HBM.

    phase 0: energy += x_tile @ x_tile^T into acc_ref (f32, P3 init/finalize);
             softmax into attn_ref (x.dtype) on the last tile.
    phase 1: out_tile = attn @ x_tile, gamma scale + residual, store.
    """
    phase = pl.program_id(1)
    n = pl.program_id(2)
    last_n = pl.num_programs(2) - 1
    x = x_ref[0]  # (C, tn)

    @pl.when(phase == 0)
    def _phase0():
        @pl.when(n == 0)
        def _init():
            acc_ref[...] = jnp.zeros_like(acc_ref)

        acc_ref[...] += lax.dot_general(
            x, x, dimension_numbers=(((1,), (1,)), ((), ())),
            preferred_element_type=jnp.float32, precision=precision)

        @pl.when(n == last_n)
        def _softmax():
            # Cast to x.dtype once here (not per phase-1 tile).
            attn_ref[...] = _attention_from_energy(acc_ref[...], attn_ref.dtype)

    @pl.when(phase == 1)
    def _phase1():
        out = jnp.dot(attn_ref[...], x, preferred_element_type=jnp.float32,
                      precision=precision)                  # (C, tn) f32
        o_ref[0] = (gamma_ref[0] * out + x.astype(jnp.float32)).astype(o_ref.dtype)


# --------------------------------------------------------------------------- #
# Wrapper
# --------------------------------------------------------------------------- #
def cam_module_forward(x, gamma, *, force_tiled=False, max_tile_n=None):
    """CAM forward: out = gamma * (softmax(rowmax(XX^T) - XX^T) @ X) + X.

    x: (B, C, H, W); gamma: scalar or (1,) parameter.  Returns (B, C, H, W).
    """
    B, C, H, W = x.shape
    N = H * W
    dtype = x.dtype
    itemsize = jnp.dtype(dtype).itemsize

    # Pad the spatial (lane) dim to a multiple of 128.  Zero columns add nothing
    # to the energy and produce zero output columns that are sliced off, so the
    # padding is exact; it keeps stores lane-dense and the tiled path available.
    Np = _round_up(N, 128)
    x_flat = x.reshape(B, C, N)
    if Np != N:
        x_flat = jnp.pad(x_flat, ((0, 0), (0, 0), (0, Np - N)))
    gamma_s = jnp.asarray(gamma, jnp.float32).reshape((1,))

    # The energies feed an exp(), so absolute matmul error is exponentially
    # amplified: use full-precision MXU passes for f32 inputs.  bf16 inputs
    # stay on the native single-pass path.
    precision = (lax.Precision.HIGHEST if dtype == jnp.float32
                 else lax.Precision.DEFAULT)

    # Generation-aware VMEM budget (128 MiB on v5e/v6e, 64 MiB on v7x).
    vmem_cap = _vmem_capacity_bytes()
    vmem_ceiling = max(vmem_cap - 8 * 2**20, 32 * 2**20)  # never exceed physical

    # Footprint estimate: double-buffered in/out blocks in x.dtype plus f32
    # epilogue temporaries (~8 bytes/elem) plus the (C, C) intermediates.
    def _footprint(cols):
        return (4 * itemsize + 8) * C * cols + 16 * C * C

    slab_need = _footprint(Np)
    use_slab = (not force_tiled) and (slab_need + 8 * 2**20 <= vmem_ceiling)

    if use_slab:
        # Single pass: x is read from HBM exactly once.
        grid = (B,)
        kernel = functools.partial(_cam_slab_kernel, precision=precision)
        in_specs = [
            pl.BlockSpec(memory_space=pltpu.SMEM),               # gamma (1,)
            pl.BlockSpec((1, C, Np), lambda b: (b, 0, 0)),       # x slab
        ]
        out_specs = pl.BlockSpec((1, C, Np), lambda b: (b, 0, 0))
        scratch_shapes = []
        dims = ("parallel",)
        vmem_need = slab_need
        bytes_accessed = 2 * B * C * Np * itemsize + 4
    else:
        # Two-phase tiled path; x streamed twice, VMEM bounded by the tile size.
        if max_tile_n is None:
            max_tile_n = 8192 if vmem_cap >= 96 * 2**20 else 2048
        tile_budget = vmem_ceiling // 2
        tn = 128
        t = 128
        while t <= min(Np, max_tile_n):
            if Np % t == 0 and _footprint(t) <= tile_budget:
                tn = t
            t += 128
        nt = Np // tn
        grid = (B, 2, nt)  # (batch, phase, spatial tile); phases/tiles sequential
        kernel = functools.partial(_cam_tiled_kernel, precision=precision)
        in_specs = [
            pl.BlockSpec(memory_space=pltpu.SMEM),                   # gamma (1,)
            pl.BlockSpec((1, C, tn), lambda b, p, n: (b, 0, n)),     # x tiles
        ]
        # Phase 0 pins the output block index at tile 0 and never writes it;
        # Pallas only writes a block back after the last consecutive step that
        # maps to it, and phase 1 fully writes every tile before its flush.
        out_specs = pl.BlockSpec((1, C, tn), lambda b, p, n: (b, 0, p * n))
        scratch_shapes = [
            pltpu.VMEM((C, C), jnp.float32),  # energy accumulator
            pltpu.VMEM((C, C), dtype),        # attention, cast once to x.dtype
        ]
        dims = ("parallel", "arbitrary", "arbitrary")
        vmem_need = _footprint(tn)
        bytes_accessed = 3 * B * C * Np * itemsize + 4

    # Ask Mosaic for what we need (+headroom) but never more than the device has.
    vmem_limit = int(min(vmem_ceiling, max(32 * 2**20, vmem_need + 16 * 2**20)))

    cost = pl.CostEstimate(
        flops=4 * B * C * C * Np,          # two matmuls, 2*C*C*N flops each
        transcendentals=B * C * C,         # exp
        bytes_accessed=int(bytes_accessed),
    )

    out_flat = pl.pallas_call(
        kernel,
        out_shape=jax.ShapeDtypeStruct((B, C, Np), dtype),
        grid_spec=pltpu.PrefetchScalarGridSpec(
            num_scalar_prefetch=0,
            grid=grid,
            in_specs=in_specs,
            out_specs=out_specs,
            scratch_shapes=scratch_shapes,
        ),
        compiler_params=pltpu.CompilerParams(
            dimension_semantics=dims,
            vmem_limit_bytes=vmem_limit,
        ),
        cost_estimate=cost,
    )(gamma_s, x_flat)

    if Np != N:
        out_flat = out_flat[:, :, :N]
    return out_flat.reshape(B, C, H, W)


# --------------------------------------------------------------------------- #
# Reference + test
# --------------------------------------------------------------------------- #
def _cam_reference(x, gamma):
    """Pure-JAX reference matching the PyTorch forward (full f32 precision)."""
    B, C, H, W = x.shape
    xf = x.reshape(B, C, H * W).astype(jnp.float32)
    energy = jnp.einsum("bcn,bdn->bcd", xf, xf, precision=lax.Precision.HIGHEST)
    energy_new = jnp.max(energy, axis=-1, keepdims=True) - energy
    attention = jax.nn.softmax(energy_new, axis=-1)
    out = jnp.einsum("bcd,bdn->bcn", attention, xf,
                     precision=lax.Precision.HIGHEST)
    out = out.reshape(B, C, H, W)
    g = jnp.asarray(gamma, jnp.float32).reshape(())
    return (g * out + xf.reshape(B, C, H, W)).astype(x.dtype)


if __name__ == "__main__":
    key = jax.random.PRNGKey(0)
    ATOL = RTOL = 2e-3

    # Modest input scale keeps energies O(10) so the exp() in the softmax does
    # not amplify last-ulp matmul differences beyond the tolerance.
    cases = [
        # (shape,          forward kwargs)
        ((2, 4, 16, 16), {}),                                       # slab fast path
        ((2, 4, 16, 16), dict(force_tiled=True, max_tile_n=128)),   # 2-tile phases
        ((1, 8, 10, 10), dict(force_tiled=True)),                   # N pad 100->128
        ((1, 8, 10, 10), {}),                                       # padding + slab
    ]
    for idx, (shape, kwargs) in enumerate(cases):
        key, sub = jax.random.split(key)
        x = 0.25 * jax.random.normal(sub, shape, dtype=jnp.float32)
        # PyTorch init is gamma = zeros(1); also exercise a nonzero gamma so the
        # attention path actually contributes.
        for gamma_val in (0.0, 0.5):
            gamma = jnp.full((1,), gamma_val, dtype=jnp.float32)
            out = cam_module_forward(x, gamma, **kwargs)
            jax.block_until_ready(out)
            ref = _cam_reference(x, gamma)
            assert out.shape == x.shape, f"shape mismatch case={idx}"
            assert jnp.allclose(out, ref, atol=ATOL, rtol=RTOL), (
                f"mismatch: case={idx} shape={shape} kwargs={kwargs} "
                f"gamma={gamma_val} "
                f"max_abs_err={float(jnp.max(jnp.abs(out - ref)))}"
            )
    print("KERNEL_OK")
</pallas_src>

<mosaic_0001>
module attributes {stable_mosaic.version = 11 : i64} {
  func.func @_cam_slab_kernel(%arg0: i32, %arg1: memref<1xf32, #tpu.memory_space<smem>>, %arg2: memref<1x4x256xf32, #tpu.memory_space<vmem>>, %arg3: memref<1x4x256xf32, #tpu.memory_space<vmem>>) attributes {dimension_semantics = [#tpu.dimension_semantics<parallel>], iteration_bounds = array<i64: 2>, scalar_prefetch = 0 : i64, scratch_operands = 0 : i64, tpu.core_type = #tpu.core_type<tc>, window_params = [{transform_indices = @transform_0, window_bounds = array<i64: 1>}, {transform_indices = @transform_1, window_bounds = array<i64: 1, 4, 256>}, {transform_indices = @transform_2, window_bounds = array<i64: 1, 4, 256>}]} {
    %c0 = arith.constant 0 : index
    %c0_0 = arith.constant 0 : index
    %c0_1 = arith.constant 0 : index
    %0 = vector.load %arg2[%c0, %c0_0, %c0_1] : memref<1x4x256xf32, #tpu.memory_space<vmem>>, vector<1x4x256xf32>
    %1 = vector.shape_cast %0 : vector<1x4x256xf32> to vector<4x256xf32>
    %cst = arith.constant dense<0.000000e+00> : vector<4x4xf32>
    %2 = tpu.matmul %1, %1, %cst {dimension_numbers = #tpu.dot_dimension_numbers<[1], [1], [0], [0], [0, 0, 1, 0], [], []>, precision = #tpu.contract_precision<fp32>} : vector<4x256xf32>, vector<4x256xf32>, vector<4x4xf32> -> vector<4x4xf32>
    %cst_2 = arith.constant dense<0x7F800000> : vector<4xf32>
    %3 = vector.multi_reduction <minimumf>, %2, %cst_2 [1] : vector<4x4xf32> to vector<4xf32>
    %4 = vector.shape_cast %3 : vector<4xf32> to vector<4x1xf32>
    %5 = vector.broadcast %4 : vector<4x1xf32> to vector<4x4xf32>
    %6 = arith.subf %5, %2 : vector<4x4xf32>
    %7 = math.exp %6 : vector<4x4xf32>
    %cst_3 = arith.constant dense<0.000000e+00> : vector<4xf32>
    %8 = vector.multi_reduction <add>, %7, %cst_3 [1] : vector<4x4xf32> to vector<4xf32>
    %9 = vector.shape_cast %8 : vector<4xf32> to vector<4x1xf32>
    %10 = tpu.reciprocal %9 : vector<4x1xf32> -> vector<4x1xf32>
    %11 = vector.broadcast %10 : vector<4x1xf32> to vector<4x4xf32>
    %12 = arith.mulf %7, %11 : vector<4x4xf32>
    %cst_4 = arith.constant dense<0.000000e+00> : vector<4x256xf32>
    %13 = tpu.matmul %12, %1, %cst_4 {dimension_numbers = #tpu.dot_dimension_numbers<[1], [0], [0], [1], [0, 0, 1, 1], [], []>, precision = #tpu.contract_precision<fp32>} : vector<4x4xf32>, vector<4x256xf32>, vector<4x256xf32> -> vector<4x256xf32>
    %c0_5 = arith.constant 0 : index
    %14 = memref.load %arg1[%c0_5] : memref<1xf32, #tpu.memory_space<smem>>
    %15 = vector.broadcast %14 : f32 to vector<4x256xf32>
    %16 = arith.mulf %15, %13 : vector<4x256xf32>
    %17 = arith.addf %16, %1 : vector<4x256xf32>
    %c0_6 = arith.constant 0 : index
    %c0_7 = arith.constant 0 : index
    %c0_8 = arith.constant 0 : index
    %18 = vector.load %arg3[%c0_6, %c0_7, %c0_8] : memref<1x4x256xf32, #tpu.memory_space<vmem>>, vector<1x4x256xf32>
    %19 = vector.shape_cast %18 : vector<1x4x256xf32> to vector<4x256xf32>
    %20 = vector.shape_cast %17 : vector<4x256xf32> to vector<1x4x256xf32>
    tpu.vector_store %arg3[%c0_6, %c0_7, %c0_8], %20 {strides = array<i32>} : memref<1x4x256xf32, #tpu.memory_space<vmem>>, vector<1x4x256xf32>,
    return
  }
  func.func @transform_0(%arg0: i32) -> i32 {
    %c0_i32 = arith.constant 0 : i32
    %c0_i32_0 = arith.constant 0 : i32
    return %c0_i32 : i32
  }
  func.func @transform_1(%arg0: i32) -> (i32, i32, i32) {
    %c0_i32 = arith.constant 0 : i32
    %c0_i32_0 = arith.constant 0 : i32
    %c0_i32_1 = arith.constant 0 : i32
    return %arg0, %c0_i32, %c0_i32_0 : i32, i32, i32
  }
  func.func @transform_2(%arg0: i32) -> (i32, i32, i32) {
    %c0_i32 = arith.constant 0 : i32
    %c0_i32_0 = arith.constant 0 : i32
    %c0_i32_1 = arith.constant 0 : i32
    return %arg0, %c0_i32, %c0_i32_0 : i32, i32, i32
  }
}

</mosaic_0001>

<bundles_post_ra>
// kernel: tpu_custom_call.1
= control target key start
LH: loop header
LB: loop body
LE: loop exit
PB: predicated region body
PF: predicated region fallthrough
CT: control target
= control target key end

     0   :  { %s1605_s0 = inlined_call_operand.<no memory space> [shape: f32[1], index: 0, kind: input, shape index: {}]   ;;  %s1606_s1 = inlined_call_operand.hbm [shape: f32[2,4,256], index: 1, kind: input, shape index: {}]   ;;  %s1607_s2 = inlined_call_operand.hbm [shape: f32[2,4,256], index: 2, kind: output, shape index: {}]  }
   0x1   :  { %7 = sst [smem:[#allocation2]] %s1605_s0 }
   0x2   :  { %8 = vsyncpa [#allocation4], 0 }
   0x3   :  { %10 = vsyncpa [#allocation4 + $0x1], 0 }
   0x4   :  { %11 = vsyncpa [#allocation5], 0 }
   0x5   :  { %13 = vsyncpa [#allocation5 + $0x1], 0  ;;  %s1426_s11 = smov 0   ;;  %s1428_s12 = smov 0  }
   0x6   :  { %s1430_s13 = smov 0   ;;  %s1432_s14 = smov 0  }
   0x7 LB: > { %s1447_s0 = sadd.s32 4294967295, %s1403_s14   ;;  %s1219_s15 = sadd.s32 4294967294, %s1403_s14   ;;  %s1403_s14 = sphi %s1432_s14, %s1622_s14   ;;  %s1399_s13 = sphi %s1430_s13, %s1621_s13   ;;  %s1395_s12 = sphi %s1428_s12, %s1620_s12   ;;  %s1391_s11 = sphi %s1426_s11, %s1619_s11  }
   0x8   : > { %s1451_s16 = sadd.s32 1, %s1403_s14   ;;  %s47_s17 = sadd.s32 1, %s1399_s13 }
   0x9   : > { %s44_s18 = ssub.s32 %s1403_s14, %s1451_s16  ;;  %p54_p0 = scmp.ne.s32.totalorder %s1399_s13, %s1395_s12 }
   0xa   : > { %p45_p1 = scmp.eq.s32.totalorder %s44_s18, 0  ;;  %p55_p2 = scmp.eq.s32.totalorder %s1403_s14, 0 }
   0xb   : > { %p60_p3 = scmp.ne.s32.totalorder %s1395_s12, %s1391_s11  ;;  %p61_p4 = scmp.eq.s32.totalorder %s1447_s0, 0 }
   0xc   : > { %s1463_s19 = scalar_select %p45_p1, %s1399_s13, %s47_s17  }
   0xd   : > { %p1465_p5 = por %p55_p2, %p54_p0  ;;  %p1469_p6 = por %p61_p4, %p60_p3 }
   0xe   : > { %p84_p7 = scmp.eq.s32.totalorder %s1447_s0, 1  ;;  %p90_p8 = scmp.eq.s32.totalorder %s1219_s15, 1 }
   0xf   : > { %p1267_p10 = scmp.lt.s32.totalorder %s1403_s14, 2  ;;  %s113_s24 = sand.u32 1, %s1399_s13  }
  0x10   : > { %p1476_p11 = por %p84_p7, %p54_p0  ;;  %p1480_p12 = por %p90_p8, %p60_p3 }
  0x11   : > { %s1233_s25 = sshll.u32 %s1403_s14, 7  ;;  %s1222_s26 = sshll.u32 %s113_s24, 3 }
  0x12   : > { %s1611_s22 = scalar_select %p1476_p11, 1, 0 }
  0x13   : > { %s1612_s23 = scalar_select %p1480_p12, 1, 0 }
  0x14   : > { %s1489_s29 = scalar_lea.hbm %s1606_s1, %s1233_s25  ;;  %s117_s30 = scalar_lea.vmem [#allocation3], %s1222_s26 }
  0x15   : > { %s125_s3 = sshll.u32 %s117_s30, 4  ;;  %p1493_p13 = pnand %p1267_p10, %p1465_p5  ;;  %s1497_s3 = int_to_ptr.vmem [resolvable:$true] %s125_s3 }
  0x16   : > { %s114_s5 = scalar_lea.sflag [#allocation4], %s113_s24  ;;  %s1307_s6 = scalar_lea.hbm %s1489_s29, 128 }
  0x17   : > { %p1308_p2 = scmp.ne.s32.totalorder %s1489_s29, %s1307_s6  ;;  %p1309_p3 = pneg %p1493_p13 }
  0x18   : > { %s1312_s9 = scalar_lea.hbm %s1606_s1, 256  ;;  %p1313_p5 = scmp.lt.u32.totalorder %s1489_s29, %s1606_s1 }
  0x19   : > { %p1310_p4 = pnand %p1309_p3, %p1308_p2  ;;  %p1314_p8 = scmp.lt.u32.totalorder %s1312_s9, %s1307_s6 }
  0x1a   : > { %p1316_p9 = scmp.lt.u32.totalorder %s1307_s6, %s1489_s29 }
  0x1b   : > { %p1311_p7 = pneg %p1310_p4  ;;  %p1315_p10 = por %p1314_p8, %p1313_p5 }
  0x1d   : > { %p1317_p0 = por %p1316_p9, %p1315_p10 }
  0x1f   : > { %p1318_p1 = pnand %p1317_p0, %p1311_p7 }
  0x21   : > { %1321 = shalt.err (!%p1318_p1)
}
  0x22   : > { %s1322_s17 = scalar_lea.vmem %s1497_s3, 128  ;;  %s1405_s18 = smov [#allocation3]  }
  0x23   : > { %p1323_p2 = scmp.ne.s32.totalorder %s1497_s3, %s1322_s17  ;;  %s1327_s20 = sshll.u32 %s1405_s18, 4  ;;  %s1328_s20 = int_to_ptr.vmem [resolvable:$false] %s1327_s20 }
  0x24   : > { %s1329_s24 = scalar_lea.vmem %s1328_s20, 256  ;;  %p1330_p11 = scmp.lt.s32.totalorder %s1497_s3, %s1328_s20 }
  0x25   : > { %p1325_p4 = pnand %p1323_p2, %p1309_p3  ;;  %p1331_p5 = scmp.lt.s32.totalorder %s1329_s24, %s1322_s17 }
  0x27   : > { %p1326_p12 = pneg %p1325_p4  ;;  %p1332_p8 = por %p1331_p5, %p1330_p11 }
  0x29   : > { %p1333_p9 = pnand %p1332_p8, %p1326_p12 }
  0x2b   : > { %1336 = shalt.err (!%p1333_p9)
}
  0x2c   : > { %1262 = dma.hbm_to_vmem [thread:$0]  (!%p1493_p13), %s1489_s29, 128, %s1497_s3, %s114_s5  }
  0x2d   : > { %p1614_p0 = scmp.lt.s32.totalorder %s1403_s14, 3  ;;  %p1615_p1 = scmp.ge.s32.totalorder %s1403_s14, 1 }
  0x2f   : > { %p131_p3 = pnand %p1615_p1, %p1614_p0 }
  0x30   : > { %s1531_s25 = sand.u32 (!%p131_p3), 1, %s1395_s12  }
  0x31   : > { %134 = sbr.rel (%p131_p3) target bundleno = 921 (0x399), region = 28  ;;  %s1226_s26 = sshll.u32 (!%p131_p3), %s1531_s25, 3 }
  0x32   : > { %s137_s27 = scalar_lea.sflag (!%p131_p3), [#allocation4], %s1531_s25  ;;  %s140_s28 = scalar_lea.vmem (!%p131_p3), [#allocation3], %s1226_s26 }
  0x38   : > { %1382 = dma.done.wait (%p1469_p6), %s137_s27, 128  }
  0x39   : > { %1384 = vsyncadd (%p1469_p6), %s137_s27, 4294967168  ;;  %v1541_v0 = vld [vmem:[%s140_s28] sm:$0xff]  ;;  %vm637_vm0 = vcmask 27648   ;;  %vm653_vm1 = vcmask 1043456   ;;  %v1406_v22 = vmov 0.0   ;;  %vm649_vm2 = vcmask 31744  }
  0x3a   : > { %v1545_v1 = vcombine.high %v1541_v0, %v1541_v0  ;;  %v167_v2 = vand.u32 4294901760, %v1541_v0  ;;  %v654_v21 = vsel %vm653_vm1, %v1541_v0, 0  ;;  %724 = vmatprep.mubr.f32.mxu1 %v1406_v22  ;;  %s1123_s21 = sld [smem:[#allocation2]]  ;;  %s1234_s29 = sshll.u32 %s1447_s0, 7 }
  0x3b   : > { %v660_v24 = vand.u32 4294901760, %v654_v21  ;;  %s160_s30 = scalar_lea.vmem [#allocation6], %s1226_s26  ;;  %s1561_s6 = scalar_lea.hbm %s1607_s2, %s1234_s29 }
  0x3c   : > { %v165_v3 = vand.u32 4294901760, %v1545_v1  ;;  %v238_v4 = vsub.f32 %v1541_v0, %v167_v2  ;;  %v656_v20 = vsel %vm653_vm1, %v1545_v1, 0  ;;  %s1149_s3 = sshll.u32 %s160_s30, 4  ;;  %s1135_s7 = scalar_lea.sflag [#allocation5], %s1531_s25  ;;  %s1563_s3 = int_to_ptr.vmem [resolvable:$true] %s1149_s3 }
  0x3d   : > { %v658_v23 = vand.u32 4294901760, %v656_v20  ;;  %v743_v30 = vsub.f32 %v654_v21, %v660_v24  ;;  %s1337_s8 = scalar_lea.vmem %s1563_s3, 128  ;;  %p1616_p11 = scmp.ne.s32.totalorder %s1611_s22, 0 }
  0x3e   : > { %166 = vmatprep.subr.mxu0 %v165_v3  ;;  %v232_v5 = vsub.f32 %v1545_v1, %v165_v3  ;;  %v239_v6 = vand.u32 4294901760, %v238_v4  ;;  %p1338_p6 = scmp.ne.s32.totalorder %s1563_s3, %s1337_s8  ;;  %s1407_s0 = smov [#allocation6]  }
  0x3f   : > { %168 = vmatpush1.xpose.msra.mxu0 %v167_v2  ;;  %659 = vmatprep.subr.mxu1 %v658_v23  ;;  %v737_v25 = vsub.f32 %v656_v20, %v658_v23  ;;  %v744_v34 = vand.u32 4294901760, %v743_v30  ;;  %s1341_s9 = sshll.u32 %s1407_s0, 4  ;;  %s1342_s9 = int_to_ptr.vmem [resolvable:$false] %s1341_s9 }
  0x40   : > { %v233_v7 = vand.u32 4294901760, %v232_v5  ;;  %v240_v8 = vsub.f32 %v238_v4, %v239_v6  ;;  %661 = vmatpush1.msra.mxu1 %v660_v24  ;;  %v1124_v42 = vstv %s1123_s21  ;;  %p1339_p12 = pnand %p1338_p6, %p1616_p11  ;;  %s1343_s10 = scalar_lea.vmem %s1342_s9, 256 }
  0x41   : > { %v738_v26 = vand.u32 4294901760, %v737_v25  ;;  %v745_v37 = vsub.f32 %v743_v30, %v744_v34  ;;  %p1344_p7 = scmp.lt.s32.totalorder %s1563_s3, %s1342_s9  ;;  %p1345_p10 = scmp.lt.s32.totalorder %s1343_s10, %s1337_s8 }
  0x42   : > { %v234_v9 = vsub.f32 %v232_v5, %v233_v7  ;;  %v241_v10 = vand.u32 4294901760, %v240_v8  ;;  %p1340_p13 = pneg %p1339_p12 }
  0x43   : > { %v739_v27 = vsub.f32 %v737_v25, %v738_v26  ;;  %v746_v40 = vand.u32 4294901760, %v745_v37  ;;  %p1346_p2 = por %p1345_p10, %p1344_p7 }
  0x44   : > { %v235_v11 = vand.u32 4294901760, %v234_v9 }
  0x45   : > { %v740_v28 = vand.u32 4294901760, %v739_v27  ;;  %p1347_p4 = pnand %p1346_p2, %p1340_p13 }
  0x46   : > { %236 = vmatprep.mubr.f32.mxu0 %v235_v11  ;;  %252 = vmatprep.subr.mxu0 %v235_v11 }
  0x47   : > { %242 = vmatmul.mubr.f32.vlgmr.msra.gmra.mrb[0].mxu0 %v241_v10  ;;  %741 = vmatprep.subr.mxu1 %v740_v28 }
  0x48   : > { %258 = vmatpush1.xpose.msra.mxu0 %v241_v10  ;;  %322 = vmatprep.mubr.f32.mxu0 %v165_v3 }
  0x49   : > { %331 = vmatprep.subr.mxu0 %v232_v5 }
  0x4f   : > { %324 = vmatmul.mubr.f32.vlgmr.msra.gmra.mrb[0].mxu0 %v167_v2 }
  0x50   : > { %334 = vmatpush1.xpose.msra.mxu0 %v238_v4  ;;  %399 = vmatprep.mubr.f32.mxu0 %v232_v5 }
  0x51   : > { %408 = vmatprep.subr.mxu0 %v165_v3 }
  0x57   : > { %402 = vmatmul.mubr.f32.vlgmr.msra.gmra.mrb[0].mxu0 %v238_v4 }
  0x58   : > { %410 = vmatpush1.xpose.msra.mxu0 %v167_v2  ;;  %476 = vmatprep.mubr.f32.mxu0 %v233_v7 }
  0x59   : > { %488 = vmatprep.subr.mxu0 %v233_v7 }
  0x5f   : > { %480 = vmatmul.mubr.f32.vlgmr.msra.gmra.mrb[0].mxu0 %v239_v6 }
  0x60   : > { %492 = vmatpush1.xpose.msra.mxu0 %v239_v6  ;;  %556 = vmatprep.mubr.f32.mxu0 %v165_v3 }
  0x61   : > { %564 = vmatprep.subr.mxu0 %v165_v3 }
  0x67   : > { %558 = vmatmul.mubr.f32.vlgmr.msra.gmra.mrb[0].mxu0 %v167_v2 }
  0x68   : > { %566 = vmatpush1.xpose.msra.mxu0 %v167_v2  ;;  %630 = vmatprep.mubr.f32.mxu0 %v165_v3 }
  0x6f   : > { %632 = vmatmul.mubr.f32.vlgmr.msra.gmra.mrb[0].mxu0 %v167_v2 }
 0x142   : > { %v633_v12 = vpop.f32.mrb[0].mxu0 }
 0x143   : > { %v635_v13 = vpop.f32.mrb[1].mxu0  ;;  %v638_v14 = vsel %vm637_vm0, %v633_v12, inf }
 0x144   : > { %639 = vmin.xlane.f32.xlu0 %v638_v14 }
 0x1d1   : > { %v640_v15 = vpop.xlane.xlu0 %639 }
 0x1d2   : > { %v641_v16 = vsub.f32 %v640_v15, %v633_v12 }
 0x1d4   : > { %v642_v17 = vmul.f32 1.442695, %v641_v16 }
 0x1d6   : > { %1303 = vpow2.f32 %v642_v17 }
 0x1e0   : > { %v1304_v18 = vpop.eup %1303 }
 0x1e1   : > { %v644_v19 = vsel %vm637_vm0, %v1304_v18, 0.0 }
 0x1e2   : > { %645 = vadd.xlane.f32.xlu0 %v644_v19 }
 0x26f   : > { %v646_v29 = vpop.xlane.xlu0 %645 }
 0x270   : > { %1305 = vrcp.f32 %v646_v29 }
 0x27a   : > { %v1306_v31 = vpop.eup %1305 }
 0x27b   : > { %v648_v32 = vmul.f32 %v1306_v31, %v1304_v18 }
 0x27d   : > { %v651_v33 = vsel %vm649_vm2, %v648_v32, 0 }
 0x27e   : > { %v725_v35 = vand.u32 4294901760, %v651_v33 }
 0x280   : > { %v726_v36 = vsub.f32 %v651_v33, %v725_v35 }
 0x282   : > { %v727_v38 = vand.u32 4294901760, %v726_v36 }
 0x284   : > { %v728_v39 = vsub.f32 %v726_v36, %v727_v38 }
 0x286   : > { %v729_v41 = vand.u32 4294901760, %v728_v39 }
 0x288   : > { %730 = vmatmul.mubr.f32.vlgmr.msra.gmra.mrb[0].mxu1 %v729_v41 }
 0x289   : > { %747 = vmatpush1.msra.mxu1 %v746_v40  ;;  %810 = vmatprep.mubr.f32.mxu1 %v1406_v22 }
 0x28a   : > { %820 = vmatprep.subr.mxu1 %v737_v25 }
 0x290   : > { %812 = vmatmul.mubr.f32.vlgmr.msra.gmra.mrb[0].mxu1 %v725_v35 }
 0x291   : > { %823 = vmatpush1.msra.mxu1 %v743_v30  ;;  %886 = vmatprep.mubr.f32.mxu1 %v1406_v22 }
 0x292   : > { %896 = vmatprep.subr.mxu1 %v658_v23 }
 0x298   : > { %889 = vmatmul.mubr.f32.vlgmr.msra.gmra.mrb[0].mxu1 %v726_v36 }
 0x299   : > { %898 = vmatpush1.msra.mxu1 %v660_v24  ;;  %961 = vmatprep.mubr.f32.mxu1 %v1406_v22 }
 0x29a   : > { %974 = vmatprep.subr.mxu1 %v738_v26 }
 0x2a0   : > { %965 = vmatmul.mubr.f32.vlgmr.msra.gmra.mrb[0].mxu1 %v727_v38 }
 0x2a1   : > { %978 = vmatpush1.msra.mxu1 %v744_v34  ;;  %1041 = vmatprep.mubr.f32.mxu1 %v1406_v22 }
 0x2a2   : > { %1050 = vmatprep.subr.mxu1 %v658_v23 }
 0x2a8   : > { %1043 = vmatmul.mubr.f32.vlgmr.msra.gmra.mrb[0].mxu1 %v725_v35 }
 0x2a9   : > { %1052 = vmatpush1.msra.mxu1 %v660_v24  ;;  %1115 = vmatprep.mubr.f32.mxu1 %v1406_v22 }
 0x2b0   : > { %1117 = vmatmul.mubr.f32.vlgmr.msra.gmra.mrb[0].mxu1 %v725_v35 }
 0x383   : > { %v1118_v43 = vpop.f32.mrb[0].mxu1 }
 0x384   : > { %v1125_v44 = vmul.f32 %v1124_v42, %v1118_v43  ;;  %v1120_v45 = vpop.f32.mrb[1].mxu1 }
 0x385   : > { %v1126_v46 = vmul.f32 %v1124_v42, %v1120_v45 }
 0x386   : > { %v1127_v47 = vadd.f32 %v1125_v44, %v1541_v0 }
 0x387   : > { %v1128_v48 = vadd.f32 %v1126_v46, %v1545_v1 }
 0x389   : > { %v1131_v49 = vcombine.low %v1127_v47, %v1128_v48 }
 0x38b   : > { %1133 = vst [vmem:[%s160_s30] sm:$0xff] %v1131_v49 }
 0x38c   : > { %1350 = shalt.err (!%p1347_p4)
}
 0x38d   : > { %s1351_s15 = scalar_lea.hbm %s1561_s6, 128  ;;  %s1355_s20 = scalar_lea.hbm %s1607_s2, 256 }
 0x38e   : > { %p1352_p5 = scmp.ne.s32.totalorder %s1561_s6, %s1351_s15  ;;  %p1356_p0 = scmp.lt.u32.totalorder %s1561_s6, %s1607_s2 }
 0x38f   : > { %p1357_p1 = scmp.lt.u32.totalorder %s1355_s20, %s1351_s15  ;;  %p1359_p6 = scmp.lt.u32.totalorder %s1351_s15, %s1561_s6 }
 0x390   : > { %p1353_p8 = pnand %p1352_p5, %p1616_p11 }
 0x391   : > { %p1358_p3 = por %p1357_p1, %p1356_p0 }
 0x392   : > { %p1354_p9 = pneg %p1353_p8 }
 0x393   : > { %p1360_p12 = por %p1359_p6, %p1358_p3 }
 0x395   : > { %p1361_p13 = pnand %p1360_p12, %p1354_p9 }
 0x397   : > { %1364 = shalt.err (!%p1361_p13)
}
 0x398   : > { %1257 = dma.vmem_to_hbm [thread:$0]  (%p1616_p11), %s1563_s3, 128, %s1561_s6, %s1135_s7  }
 0x399 PF: > { %s1161_s26 = sand.u32 1, %s1391_s11   ;;  %p1617_p7 = scmp.ne.s32.totalorder %s1612_s23, 0 }
 0x39a   : > { %p1618_p10 = scmp.ge.s32.totalorder %s1403_s14, 2  ;;  %s1162_s27 = scalar_lea.sflag [#allocation5], %s1161_s26 }
 0x39c   : > { %p1264_p2 = pnand %p1618_p10, %p1617_p7 }
 0x39e   : > { %1386 = dma.done.wait (!%p1264_p2), %s1162_s27, 128  }
 0x39f   : > { %1388 = vsyncadd (!%p1264_p2), %s1162_s27, 4294967168  ;;  %p16_p4 = scmp.ge.s32.totalorder %s1451_s16, 4   ;;  %s1619_s11 = smov %s1395_s12 }
 0x3a0   : > { %s1620_s12 = smov %s1399_s13  ;;  %s1621_s13 = smov %s1463_s19 }
 0x3a1   : > { %s1622_s14 = smov %s1451_s16  ;;  %18 = sbr.rel (!%p16_p4) target bundleno = 7 (0x7), region = 73 }
 0x3a8   :  { %1167 = vsyncpa [#allocation4], 1 }
 0x3a9   :  { %1169 = vsyncpa [#allocation4 + $0x1], 1 }
 0x3aa   :  { %1170 = vsyncpa [#allocation5], 1 }
 0x3ab   :  { %1172 = vsyncpa [#allocation5 + $0x1], 1 }

</bundles_post_ra>
